<compile_context>
chip_gen: v7x
topology: tpu7x:2x2x1
jax: 0.10.0
libtpu: 0.0.40
codegen_flags: <defaults>
</compile_context>

<pallas_src>
import functools

import jax
import jax.numpy as jnp
from jax.experimental import pallas as pl
from jax.experimental.pallas import tpu as pltpu

HIDDEN = 512   # fixed by the module (fc1 -> 512)
LANE = 128
SUBLANE = 8


def _round_up(n, m):
    return ((n + m - 1) // m) * m


def _domain_classifier_kernel(x_ref, w1_ref, b1_ref, w2_ref, b2_ref, o_ref):
    # x_ref: (bb, C), w1_ref: (C, 512), b1_ref: (1, 512)
    # w2_ref: (512, K), b2_ref: (1, K), o_ref: (bb, K)
    x = x_ref[...]
    if w1_ref.dtype != jnp.float32:
        # bf16 (etc.) weights: cast LHS so the MXU takes the single-pass low-precision path.
        x = x.astype(w1_ref.dtype)

    # fc1 + bias (MXU, f32 accumulate). grad_reverse identity fwd; Dropout2d identity in eval.
    h = jnp.dot(x, w1_ref[...], preferred_element_type=jnp.float32)
    h = h + b1_ref[...].astype(jnp.float32)

    # leaky_relu, negative_slope=0.01 (< 1, so max(h, 0.01*h) is exact)
    h = jnp.maximum(h, 0.01 * h)

    # fc2 + bias. Keep activations f32 unless the weights themselves are lower precision.
    h_in = h if w2_ref.dtype == jnp.float32 else h.astype(w2_ref.dtype)
    z = jnp.dot(h_in, w2_ref[...], preferred_element_type=jnp.float32)
    z = z + b2_ref[...].astype(jnp.float32)

    o_ref[...] = jax.nn.sigmoid(z).astype(o_ref.dtype)


@functools.partial(jax.jit, static_argnames=("block_b",))
def domain_classifier_forward(x, w1, b1, w2, b2, *, block_b=512):
    B, C = x.shape
    K = w2.shape[1]
    out_dtype = jnp.float32

    if B == 0:  # empty batch: no grid to run
        return jnp.zeros((0, K), out_dtype)

    # Batch tile: big enough to amortize the ~0.35us per-grid-step overhead, but small
    # enough that the batch grid has >= 2 blocks so "parallel" can use both v7x TCs.
    bb = max(SUBLANE, min(block_b, _round_up(pl.cdiv(B, 2), SUBLANE)))
    grid = (pl.cdiv(B, bb),)

    itemsize = lambda a: a.size * a.dtype.itemsize
    cost = pl.CostEstimate(
        flops=2 * B * (C * HIDDEN + HIDDEN * K),
        transcendentals=B * K,                      # sigmoid exp
        bytes_accessed=(itemsize(x) + itemsize(w1) + itemsize(b1)
                        + itemsize(w2) + itemsize(b2) + B * K * 4),
    )

    # Explicit VMEM budget: x/out tiles double-buffered + (default double-buffered) weights,
    # with 2x headroom, floored at 32 MiB and capped at v7x's 64 MiB physical VMEM.
    vmem_bytes = (2 * bb * max(C, LANE) * x.dtype.itemsize
                  + 2 * bb * max(K, LANE) * 4
                  + 2 * (itemsize(w1) + itemsize(b1) + itemsize(w2) + itemsize(b2)))
    vmem_limit = int(min(max(2 * vmem_bytes, 32 << 20), 64 << 20))

    out = pl.pallas_call(
        _domain_classifier_kernel,
        out_shape=jax.ShapeDtypeStruct((B, K), out_dtype),
        grid_spec=pltpu.PrefetchScalarGridSpec(
            num_scalar_prefetch=0,
            grid=grid,
            in_specs=[
                pl.BlockSpec((bb, C), lambda i: (i, 0)),       # x tile (streams over batch)
                pl.BlockSpec((C, HIDDEN), lambda i: (0, 0)),   # W1 (resident)
                pl.BlockSpec((1, HIDDEN), lambda i: (0, 0)),   # b1 (resident)
                pl.BlockSpec((HIDDEN, K), lambda i: (0, 0)),   # W2 (resident)
                pl.BlockSpec((1, K), lambda i: (0, 0)),        # b2 (resident)
            ],
            out_specs=pl.BlockSpec((bb, K), lambda i: (i, 0)),
        ),
        compiler_params=pltpu.CompilerParams(
            dimension_semantics=("parallel",),   # batch axis shards across TCs (megacore / v7x)
            vmem_limit_bytes=vmem_limit,
        ),
        cost_estimate=cost,
    )(x, w1, b1, w2, b2)

    return out


def init_params(key, channel, cam_classes, dtype=jnp.float32):
    """Deterministic init mimicking nn.Linear defaults (uniform +/- 1/sqrt(fan_in)).

    Weights are stored pre-transposed vs PyTorch's (out, in) convention so the kernel
    runs plain x @ W matmuls on the MXU; any dtype/layout prep happens once here,
    not per forward call.
    """
    k1, k2, k3, k4 = jax.random.split(key, 4)
    bound1 = 1.0 / jnp.sqrt(channel)
    bound2 = 1.0 / jnp.sqrt(HIDDEN)
    w1 = jax.random.uniform(k1, (channel, HIDDEN), dtype, -bound1, bound1)
    b1 = jax.random.uniform(k2, (1, HIDDEN), dtype, -bound1, bound1)
    w2 = jax.random.uniform(k3, (HIDDEN, cam_classes), dtype, -bound2, bound2)
    b2 = jax.random.uniform(k4, (1, cam_classes), dtype, -bound2, bound2)
    return w1, b1, w2, b2


def reference_forward(x, w1, b1, w2, b2):
    h = x @ w1 + b1
    h = jnp.where(h >= 0.0, h, 0.01 * h)
    z = h @ w2 + b2
    return jax.nn.sigmoid(z)


if __name__ == "__main__":
    key = jax.random.PRNGKey(0)
    kx, kp = jax.random.split(key)

    batch = 12          # not a multiple of 8: exercises the ragged (masked) last block
    channel = 32
    cam_classes = 8     # narrow output stays narrow (no lane padding / slice)

    x = jax.random.normal(kx, (batch, channel), jnp.float32)
    w1, b1, w2, b2 = init_params(kp, channel, cam_classes)

    out = domain_classifier_forward(x, w1, b1, w2, b2)
    out = jax.block_until_ready(out)

    ref = reference_forward(x, w1, b1, w2, b2)
    assert out.shape == (batch, cam_classes)
    assert jnp.allclose(out, ref, atol=1e-5, rtol=1e-5), "mismatch vs reference"

    print("KERNEL_OK")
</pallas_src>

<mosaic_0001>
module attributes {stable_mosaic.version = 11 : i64} {
  func.func @_domain_classifier_kernel(%arg0: i32, %arg1: memref<8x32xf32, #tpu.memory_space<vmem>>, %arg2: memref<32x512xf32, #tpu.memory_space<vmem>>, %arg3: memref<1x512xf32, #tpu.memory_space<vmem>>, %arg4: memref<512x8xf32, #tpu.memory_space<vmem>>, %arg5: memref<1x8xf32, #tpu.memory_space<vmem>>, %arg6: memref<8x8xf32, #tpu.memory_space<vmem>>) attributes {dimension_semantics = [#tpu.dimension_semantics<parallel>], iteration_bounds = array<i64: 2>, scalar_prefetch = 0 : i64, scratch_operands = 0 : i64, tpu.core_type = #tpu.core_type<tc>, window_params = [{transform_indices = @transform_0, window_bounds = array<i64: 8, 32>}, {pipeline_mode = #tpu.pipeline_mode<synchronous>, transform_indices = @transform_1, window_bounds = array<i64: 32, 512>}, {pipeline_mode = #tpu.pipeline_mode<synchronous>, transform_indices = @transform_2, window_bounds = array<i64: 1, 512>}, {pipeline_mode = #tpu.pipeline_mode<synchronous>, transform_indices = @transform_3, window_bounds = array<i64: 512, 8>}, {pipeline_mode = #tpu.pipeline_mode<synchronous>, transform_indices = @transform_4, window_bounds = array<i64: 1, 8>}, {transform_indices = @transform_5, window_bounds = array<i64: 8, 8>}]} {
    %c0 = arith.constant 0 : index
    %c0_0 = arith.constant 0 : index
    %0 = vector.load %arg1[%c0, %c0_0] : memref<8x32xf32, #tpu.memory_space<vmem>>, vector<8x32xf32>
    %c0_1 = arith.constant 0 : index
    %c0_2 = arith.constant 0 : index
    %1 = vector.load %arg2[%c0_1, %c0_2] : memref<32x512xf32, #tpu.memory_space<vmem>>, vector<32x512xf32>
    %cst = arith.constant dense<0.000000e+00> : vector<8x512xf32>
    %2 = tpu.matmul %0, %1, %cst {dimension_numbers = #tpu.dot_dimension_numbers<[1], [0], [0], [1], [0, 0, 1, 1], [], []>} : vector<8x32xf32>, vector<32x512xf32>, vector<8x512xf32> -> vector<8x512xf32>
    %c0_3 = arith.constant 0 : index
    %c0_4 = arith.constant 0 : index
    %3 = vector.load %arg3[%c0_3, %c0_4] : memref<1x512xf32, #tpu.memory_space<vmem>>, vector<1x512xf32>
    %4 = vector.broadcast %3 : vector<1x512xf32> to vector<8x512xf32>
    %5 = arith.addf %2, %4 : vector<8x512xf32>
    %cst_5 = arith.constant 0.00999999977 : f32
    %6 = vector.broadcast %cst_5 : f32 to vector<8x512xf32>
    %7 = arith.mulf %6, %5 : vector<8x512xf32>
    %8 = arith.maximumf %5, %7 : vector<8x512xf32>
    %c0_6 = arith.constant 0 : index
    %c0_7 = arith.constant 0 : index
    %9 = vector.load %arg4[%c0_6, %c0_7] : memref<512x8xf32, #tpu.memory_space<vmem>>, vector<512x8xf32>
    %cst_8 = arith.constant dense<0.000000e+00> : vector<8x8xf32>
    %10 = tpu.matmul %8, %9, %cst_8 {dimension_numbers = #tpu.dot_dimension_numbers<[1], [0], [0], [1], [0, 0, 1, 1], [], []>} : vector<8x512xf32>, vector<512x8xf32>, vector<8x8xf32> -> vector<8x8xf32>
    %c0_9 = arith.constant 0 : index
    %c0_10 = arith.constant 0 : index
    %11 = vector.load %arg5[%c0_9, %c0_10] : memref<1x8xf32, #tpu.memory_space<vmem>>, vector<1x8xf32>
    %12 = vector.broadcast %11 : vector<1x8xf32> to vector<8x8xf32>
    %13 = arith.addf %10, %12 : vector<8x8xf32>
    %14 = arith.negf %13 : vector<8x8xf32>
    %15 = math.exp %14 : vector<8x8xf32>
    %cst_11 = arith.constant 1.000000e+00 : f32
    %16 = vector.broadcast %cst_11 : f32 to vector<8x8xf32>
    %17 = arith.addf %16, %15 : vector<8x8xf32>
    %18 = arith.divf %16, %17 : vector<8x8xf32>
    %c0_12 = arith.constant 0 : index
    %c0_13 = arith.constant 0 : index
    %19 = vector.load %arg6[%c0_12, %c0_13] : memref<8x8xf32, #tpu.memory_space<vmem>>, vector<8x8xf32>
    tpu.vector_store %arg6[%c0_12, %c0_13], %18 {strides = array<i32>} : memref<8x8xf32, #tpu.memory_space<vmem>>, vector<8x8xf32>,
    return
  }
  func.func @transform_0(%arg0: i32) -> (i32, i32) {
    %c0_i32 = arith.constant 0 : i32
    %c0_i32_0 = arith.constant 0 : i32
    return %arg0, %c0_i32 : i32, i32
  }
  func.func @transform_1(%arg0: i32) -> (i32, i32) {
    %c0_i32 = arith.constant 0 : i32
    %c0_i32_0 = arith.constant 0 : i32
    %c0_i32_1 = arith.constant 0 : i32
    return %c0_i32, %c0_i32_0 : i32, i32
  }
  func.func @transform_2(%arg0: i32) -> (i32, i32) {
    %c0_i32 = arith.constant 0 : i32
    %c0_i32_0 = arith.constant 0 : i32
    %c0_i32_1 = arith.constant 0 : i32
    return %c0_i32, %c0_i32_0 : i32, i32
  }
  func.func @transform_3(%arg0: i32) -> (i32, i32) {
    %c0_i32 = arith.constant 0 : i32
    %c0_i32_0 = arith.constant 0 : i32
    %c0_i32_1 = arith.constant 0 : i32
    return %c0_i32, %c0_i32_0 : i32, i32
  }
  func.func @transform_4(%arg0: i32) -> (i32, i32) {
    %c0_i32 = arith.constant 0 : i32
    %c0_i32_0 = arith.constant 0 : i32
    %c0_i32_1 = arith.constant 0 : i32
    return %c0_i32, %c0_i32_0 : i32, i32
  }
  func.func @transform_5(%arg0: i32) -> (i32, i32) {
    %c0_i32 = arith.constant 0 : i32
    %c0_i32_0 = arith.constant 0 : i32
    return %arg0, %c0_i32 : i32, i32
  }
}

</mosaic_0001>

<bundles_post_ra>
// kernel: domain_classifier_forward.1
= control target key start
LH: loop header
LB: loop body
LE: loop exit
PB: predicated region body
PF: predicated region fallthrough
CT: control target
= control target key end

     0   :  { %s900_s18 = smov 0   ;;  %s1172_s0 = inlined_call_operand.vmem [shape: f32[12,32], index: 0, kind: input, shape index: {}]   ;;  %s1173_s1 = inlined_call_operand.vmem [shape: f32[32,512], index: 1, kind: input, shape index: {}]   ;;  %s1174_s2 = inlined_call_operand.vmem [shape: f32[1,512], index: 2, kind: input, shape index: {}]   ;;  %s1175_s3 = inlined_call_operand.vmem [shape: f32[512,8], index: 3, kind: input, shape index: {}]   ;;  %s1176_s4 = inlined_call_operand.vmem [shape: f32[1,8], index: 4, kind: input, shape index: {}]   ;;  %s1177_s5 = inlined_call_operand.vmem [shape: f32[12,8], index: 5, kind: output, shape index: {}]  }
   0x1 LB: > { %s685_s19 = sadd.s32 4294967295, %s867_s18   ;;  %p689_p0 = scmp.ge.s32.totalorder %s867_s18, 1  ;;  %s867_s18 = sphi %s900_s18, %s15_s18  }
   0x2   : > { %p186_p1 = scmp.lt.s32.totalorder %s867_s18, 3 }
   0x4   : > { %p187_p2 = pnand %p689_p0, %p186_p1 }
   0x5   : > { %v222_v0 = vld [vmem:[%s1173_s1 + $0x8] sm:$0xff] (!%p187_p2)  ;;  %v224_v2 = vld [vmem:[%s1173_s1 + $0x18] sm:$0xff] (!%p187_p2)  ;;  %p212_p3 = scmp.lt.s32.totalorder (!%p187_p2), %s685_s19, 1  ;;  %v221_v5 = vld [vmem:[%s1173_s1] sm:$0xff] (!%p187_p2)  ;;  %v869_v7 = vmov (!%p187_p2), 0.0   ;;  %vm259_vm0 = vcmask (!%p187_p2), 261120  }
   0x6   : > { %190 = sbr.rel (%p187_p2) target bundleno = 483 (0x1e3), region = 40  ;;  %v226_v1 = vld [vmem:[%s1173_s1 + $0x28] sm:$0xff] (!%p187_p2)  ;;  %v228_v4 = vld [vmem:[%s1173_s1 + $0x38] sm:$0xff] (!%p187_p2)  ;;  %v225_v6 = vld [vmem:[%s1173_s1 + $0x20] sm:$0xff] (!%p187_p2)  ;;  %327 = vmatprep.mubr.f32.mxu0 (!%p187_p2), %v869_v7  ;;  %398 = vmatprep.mubr.f32.mxu1 (!%p187_p2), %v869_v7  ;;  %vm630_vm1 = vcmask (!%p187_p2), 64512  }
   0x7   : > { %v768_v3 = vpack.c.bf16 (!%p187_p2), %v226_v1, %v222_v0  ;;  %v776_v8 = vpack.c.bf16 (!%p187_p2), %v228_v4, %v224_v2  ;;  %v770_v9 = vpack.c.bf16 (!%p187_p2), %v225_v6, %v221_v5  ;;  %v223_v10 = vld [vmem:[%s1173_s1 + $0x10] sm:$0xff] (!%p187_p2)  ;;  %v230_v12 = vld [vmem:[%s1173_s1 + $0x48] sm:$0xff] (!%p187_p2)  ;;  %v232_v15 = vld [vmem:[%s1173_s1 + $0x58] sm:$0xff] (!%p187_p2) }
   0x8   : > { %v227_v11 = vld [vmem:[%s1173_s1 + $0x30] sm:$0xff] (!%p187_p2)  ;;  %v234_v14 = vld [vmem:[%s1173_s1 + $0x68] sm:$0xff] (!%p187_p2)  ;;  %v236_v16 = vld [vmem:[%s1173_s1 + $0x78] sm:$0xff] (!%p187_p2) }
   0x9   : > { %769 = vmatprep.subr.bf16.mxu0 (!%p187_p2), %v768_v3  ;;  %v778_v13 = vpack.c.bf16 (!%p187_p2), %v227_v11, %v223_v10  ;;  %777 = vmatprep.subr.bf16.mxu1 (!%p187_p2), %v776_v8  ;;  %v772_v17 = vpack.c.bf16 (!%p187_p2), %v234_v14, %v230_v12  ;;  %v780_v18 = vpack.c.bf16 (!%p187_p2), %v236_v16, %v232_v15  ;;  %v229_v19 = vld [vmem:[%s1173_s1 + $0x40] sm:$0xff] (!%p187_p2)  ;;  %v231_v21 = vld [vmem:[%s1173_s1 + $0x50] sm:$0xff] (!%p187_p2)  ;;  %v430_v25 = vld [vmem:[%s1175_s3 + $0x88] sm:$0xff] (!%p187_p2) }
   0xa   : > { %771 = vmatpush1.bf16.msra.mxu0 (!%p187_p2), %v770_v9  ;;  %v233_v20 = vld [vmem:[%s1173_s1 + $0x60] sm:$0xff] (!%p187_p2)  ;;  %v235_v23 = vld [vmem:[%s1173_s1 + $0x70] sm:$0xff] (!%p187_p2)  ;;  %v462_v30 = vld [vmem:[%s1175_s3 + $0x188] sm:$0xff] (!%p187_p2) }
   0xb   : > { %779 = vmatpush1.bf16.msra.mxu1 (!%p187_p2), %v778_v13  ;;  %v774_v22 = vpack.c.bf16 (!%p187_p2), %v233_v20, %v229_v19  ;;  %v429_v24 = vld [vmem:[%s1175_s3 + $0x80] sm:$0xff] (!%p187_p2)  ;;  %773 = vmatprep.subr.bf16.mxu0 (!%p187_p2), %v772_v17  ;;  %v782_v26 = vpack.c.bf16 (!%p187_p2), %v235_v23, %v231_v21  ;;  %v414_v33 = vld [vmem:[%s1175_s3 + $0x8] sm:$0xff] (!%p187_p2)  ;;  %v431_v37 = vld [vmem:[%s1175_s3 + $0x90] sm:$0xff] (!%p187_p2) }
   0xc   : > { %781 = vmatprep.subr.bf16.mxu1 (!%p187_p2), %v780_v18  ;;  %v784_v28 = vpack.c.bf16 (!%p187_p2), %v430_v25, %v429_v24  ;;  %v461_v29 = vld [vmem:[%s1175_s3 + $0x180] sm:$0xff] (!%p187_p2)  ;;  %v446_v36 = vld [vmem:[%s1175_s3 + $0x108] sm:$0xff] (!%p187_p2)  ;;  %v432_v38 = vld [vmem:[%s1175_s3 + $0x98] sm:$0xff] (!%p187_p2) }
   0xd   : > { %s1179_s19 = smov (!%p212_p3, %s685_s19), 1  ;;  %v816_v31 = vpack.c.bf16 %v462_v30, %v461_v29  ;;  %v413_v32 = vld [vmem:[%s1175_s3] sm:$0xff]  ;;  %v788_v40 = vpack.c.bf16 %v432_v38, %v431_v37  ;;  %v463_v41 = vld [vmem:[%s1175_s3 + $0x190] sm:$0xff]  ;;  %v464_v42 = vld [vmem:[%s1175_s3 + $0x198] sm:$0xff] }
   0xe   : > { %s690_s27 = sshll.u32 %s1179_s19, 3  ;;  %v445_v34 = vld [vmem:[%s1175_s3 + $0x100] sm:$0xff]  ;;  %775 = vmatpush1.bf16.msra.mxu0 %v774_v22  ;;  %v786_v35 = vpack.c.bf16 %v414_v33, %v413_v32  ;;  %v415_v43 = vld [vmem:[%s1175_s3 + $0x10] sm:$0xff]  ;;  %v820_v44 = vpack.c.bf16 %v464_v42, %v463_v41  ;;  %v416_v45 = vld [vmem:[%s1175_s3 + $0x18] sm:$0xff] }
   0xf   : > { %s215_s7 = scalar_lea.vmem %s1172_s0, %s690_s27  ;;  %783 = vmatpush1.bf16.msra.mxu1 %v782_v26  ;;  %785 = vmatprep.subr.bf16.mxu0 %v784_v28  ;;  %v818_v39 = vpack.c.bf16 %v446_v36, %v445_v34  ;;  %v447_v46 = vld [vmem:[%s1175_s3 + $0x110] sm:$0xff]  ;;  %v448_v47 = vld [vmem:[%s1175_s3 + $0x118] sm:$0xff]  ;;  %v433_v48 = vld [vmem:[%s1175_s3 + $0xa0] sm:$0xff]  ;;  %v790_v51 = vpack.c.bf16 %v416_v45, %v415_v43  ;;  %s219_s10 = scalar_lea.vmem %s1177_s5, %s690_s27 }
  0x10   : > { %v220_v27 = vld [vmem:[%s215_s7] sm:$0xff]  ;;  %817 = vmatprep.subr.bf16.mxu1 %v816_v31  ;;  %v434_v49 = vld [vmem:[%s1175_s3 + $0xa8] sm:$0xff]  ;;  %v822_v53 = vpack.c.bf16 %v448_v47, %v447_v46  ;;  %v435_v60 = vld [vmem:[%s1175_s3 + $0xb0] sm:$0xff] }
  0x11   : > { %692 = vmatmul.mubr.msk.f32.vlgmr.msra.gmra.mrb[0].mxu0 %vm259_vm0, %v220_v27  ;;  %v465_v50 = vld [vmem:[%s1175_s3 + $0x1a0] sm:$0xff]  ;;  %v466_v52 = vld [vmem:[%s1175_s3 + $0x1a8] sm:$0xff]  ;;  %v792_v54 = vpack.c.bf16 %v434_v49, %v433_v48  ;;  %v436_v61 = vld [vmem:[%s1175_s3 + $0xb8] sm:$0xff] }
  0x12   : > { %693 = vmatmul.mubr.msk.f32.vlgmr.msra.gmra.mrb[0].mxu1 %vm259_vm0, %v220_v27  ;;  %787 = vmatpush3.bf16.msra.mxu0 %v786_v35  ;;  %v417_v55 = vld [vmem:[%s1175_s3 + $0x20] sm:$0xff]  ;;  %v418_v56 = vld [vmem:[%s1175_s3 + $0x28] sm:$0xff]  ;;  %v824_v58 = vpack.c.bf16 %v466_v52, %v465_v50  ;;  %v467_v62 = vld [vmem:[%s1175_s3 + $0x1b0] sm:$0xff]  ;;  %v796_v2 = vpack.c.bf16 %v436_v61, %v435_v60 }
  0x13   : > { %819 = vmatpush3.bf16.msra.mxu1 %v818_v39  ;;  %789 = vmatprep.subr.bf16.mxu0 %v788_v40  ;;  %v449_v57 = vld [vmem:[%s1175_s3 + $0x120] sm:$0xff]  ;;  %v450_v59 = vld [vmem:[%s1175_s3 + $0x128] sm:$0xff]  ;;  %v468_v63 = vld [vmem:[%s1175_s3 + $0x1b8] sm:$0xff]  ;;  %v794_v0 = vpack.c.bf16 %v418_v56, %v417_v55 }
  0x14   : > { %821 = vmatprep.subr.bf16.mxu1 %v820_v44  ;;  %v826_v1 = vpack.c.bf16 %v450_v59, %v449_v57  ;;  %v419_v3 = vld [vmem:[%s1175_s3 + $0x30] sm:$0xff]  ;;  %v420_v4 = vld [vmem:[%s1175_s3 + $0x38] sm:$0xff]  ;;  %v828_v6 = vpack.c.bf16 %v468_v63, %v467_v62  ;;  %v437_v8 = vld [vmem:[%s1175_s3 + $0xc0] sm:$0xff] }
  0x15   : > { %v451_v5 = vld [vmem:[%s1175_s3 + $0x130] sm:$0xff]  ;;  %v452_v7 = vld [vmem:[%s1175_s3 + $0x138] sm:$0xff]  ;;  %v438_v9 = vld [vmem:[%s1175_s3 + $0xc8] sm:$0xff]  ;;  %v798_v12 = vpack.c.bf16 %v420_v4, %v419_v3 }
  0x16   : > { %791 = vmatpush3.bf16.msra.mxu0 %v790_v51  ;;  %v469_v10 = vld [vmem:[%s1175_s3 + $0x1c0] sm:$0xff]  ;;  %v470_v11 = vld [vmem:[%s1175_s3 + $0x1c8] sm:$0xff]  ;;  %v830_v13 = vpack.c.bf16 %v452_v7, %v451_v5  ;;  %v800_v14 = vpack.c.bf16 %v438_v9, %v437_v8  ;;  %v439_v20 = vld [vmem:[%s1175_s3 + $0xd0] sm:$0xff] }
  0x17   : > { %823 = vmatpush3.bf16.msra.mxu1 %v822_v53  ;;  %793 = vmatprep.subr.bf16.mxu0 %v792_v54  ;;  %v421_v15 = vld [vmem:[%s1175_s3 + $0x40] sm:$0xff]  ;;  %v422_v16 = vld [vmem:[%s1175_s3 + $0x48] sm:$0xff]  ;;  %v832_v18 = vpack.c.bf16 %v470_v11, %v469_v10  ;;  %v440_v21 = vld [vmem:[%s1175_s3 + $0xd8] sm:$0xff] }
  0x18   : > { %825 = vmatprep.subr.bf16.mxu1 %v824_v58  ;;  %v453_v17 = vld [vmem:[%s1175_s3 + $0x140] sm:$0xff]  ;;  %v454_v19 = vld [vmem:[%s1175_s3 + $0x148] sm:$0xff]  ;;  %v471_v22 = vld [vmem:[%s1175_s3 + $0x1d0] sm:$0xff]  ;;  %v802_v24 = vpack.c.bf16 %v422_v16, %v421_v15  ;;  %v804_v26 = vpack.c.bf16 %v440_v21, %v439_v20  ;;  %v239_v58 = vlaneseq }
  0x19   : > { %v472_v23 = vld [vmem:[%s1175_s3 + $0x1d8] sm:$0xff]  ;;  %v834_v25 = vpack.c.bf16 %v454_v19, %v453_v17  ;;  %v423_v27 = vld [vmem:[%s1175_s3 + $0x50] sm:$0xff]  ;;  %v441_v34 = vld [vmem:[%s1175_s3 + $0xe0] sm:$0xff] }
  0x1a   : > { %795 = vmatpush3.bf16.msra.mxu0 %v794_v0  ;;  %v424_v28 = vld [vmem:[%s1175_s3 + $0x58] sm:$0xff]  ;;  %v836_v29 = vpack.c.bf16 %v472_v23, %v471_v22  ;;  %v455_v30 = vld [vmem:[%s1175_s3 + $0x150] sm:$0xff]  ;;  %v442_v35 = vld [vmem:[%s1175_s3 + $0xe8] sm:$0xff]  ;;  %v240_v59 = vshrl.u32 %v239_v58, 7 }
  0x1b   : > { %827 = vmatpush3.bf16.msra.mxu1 %v826_v1  ;;  %797 = vmatprep.subr.bf16.mxu0 %v796_v2  ;;  %v456_v31 = vld [vmem:[%s1175_s3 + $0x158] sm:$0xff]  ;;  %v806_v32 = vpack.c.bf16 %v424_v28, %v423_v27  ;;  %v473_v36 = vld [vmem:[%s1175_s3 + $0x1e0] sm:$0xff]  ;;  %v808_v37 = vpack.c.bf16 %v442_v35, %v441_v34  ;;  %v474_v38 = vld [vmem:[%s1175_s3 + $0x1e8] sm:$0xff] }
  0x1c   : > { %829 = vmatprep.subr.bf16.mxu1 %v828_v6  ;;  %v838_v33 = vpack.c.bf16 %v456_v31, %v455_v30  ;;  %v425_v39 = vld [vmem:[%s1175_s3 + $0x60] sm:$0xff]  ;;  %v426_v40 = vld [vmem:[%s1175_s3 + $0x68] sm:$0xff]  ;;  %v840_v41 = vpack.c.bf16 %v474_v38, %v473_v36  ;;  %v443_v46 = vld [vmem:[%s1175_s3 + $0xf0] sm:$0xff]  ;;  %v241_v60 = vsub.s32 0, %v240_v59  ;;  %v249_v62 = vsub.s32 2, %v240_v59 }
  0x1d   : > { %v810_v42 = vpack.c.bf16 %v426_v40, %v425_v39  ;;  %v457_v43 = vld [vmem:[%s1175_s3 + $0x160] sm:$0xff]  ;;  %v458_v44 = vld [vmem:[%s1175_s3 + $0x168] sm:$0xff]  ;;  %v444_v47 = vld [vmem:[%s1175_s3 + $0xf8] sm:$0xff]  ;;  %v245_v63 = vsub.s32 1, %v240_v59  ;;  %v253_v0 = vsub.s32 3, %v240_v59 }
  0x1e   : > { %799 = vmatpush3.bf16.msra.mxu0 %v798_v12  ;;  %v842_v45 = vpack.c.bf16 %v458_v44, %v457_v43  ;;  %v475_v48 = vld [vmem:[%s1175_s3 + $0x1f0] sm:$0xff]  ;;  %v812_v49 = vpack.c.bf16 %v444_v47, %v443_v46  ;;  %v476_v50 = vld [vmem:[%s1175_s3 + $0x1f8] sm:$0xff]  ;;  %v237_v61 = vld [vmem:[%s1174_s2] sm:$0xf] }
  0x1f   : > { %831 = vmatpush3.bf16.msra.mxu1 %v830_v13  ;;  %801 = vmatprep.subr.bf16.mxu0 %v800_v14  ;;  %v427_v51 = vld [vmem:[%s1175_s3 + $0x70] sm:$0xff]  ;;  %v428_v52 = vld [vmem:[%s1175_s3 + $0x78] sm:$0xff]  ;;  %v844_v53 = vpack.c.bf16 %v476_v50, %v475_v48  ;;  %v242_v1 = vrot.slane %v237_v61, %v241_v60  ;;  %v250_v2 = vrot.slane %v237_v61, %v249_v62  ;;  %v694_v23 = vld [vmem:[%s1176_s4] ss:$0 sm:$0xff] }
  0x20   : > { %833 = vmatprep.subr.bf16.mxu1 %v832_v18  ;;  %v814_v54 = vpack.c.bf16 %v428_v52, %v427_v51  ;;  %v459_v55 = vld [vmem:[%s1175_s3 + $0x170] sm:$0xff]  ;;  %v460_v56 = vld [vmem:[%s1175_s3 + $0x178] sm:$0xff]  ;;  %v246_v3 = vrot.slane %v237_v61, %v245_v63  ;;  %v254_v4 = vrot.slane %v237_v61, %v253_v0 }
  0x21   : > { %v846_v57 = vpack.c.bf16 %v460_v56, %v459_v55 }
  0x22   : > { %803 = vmatpush3.bf16.msra.mxu0 %v802_v24 }
  0x23   : > { %835 = vmatpush3.bf16.msra.mxu1 %v834_v25  ;;  %805 = vmatprep.subr.bf16.mxu0 %v804_v26 }
  0x24   : > { %837 = vmatprep.subr.bf16.mxu1 %v836_v29 }
  0x26   : > { %807 = vmatpush3.bf16.msra.mxu0 %v806_v32 }
  0x27   : > { %839 = vmatpush3.bf16.msra.mxu1 %v838_v33  ;;  %809 = vmatprep.subr.bf16.mxu0 %v808_v37 }
  0x28   : > { %841 = vmatprep.subr.bf16.mxu1 %v840_v41 }
  0x2a   : > { %811 = vmatpush3.bf16.msra.mxu0 %v810_v42 }
  0x2b   : > { %843 = vmatpush3.bf16.msra.mxu1 %v842_v45  ;;  %813 = vmatprep.subr.bf16.mxu0 %v812_v49 }
  0x2c   : > { %845 = vmatprep.subr.bf16.mxu1 %v844_v53 }
  0x2e   : > { %815 = vmatpush3.bf16.msra.mxu0 %v814_v54 }
  0x2f   : > { %847 = vmatpush3.bf16.msra.mxu1 %v846_v57 }
  0xe4   : > { %v329_v5 = vpop.f32.mrb[0].mxu0 }
  0xe5   : > { %v330_v6 = vadd.f32 %v329_v5, %v242_v1  ;;  %v400_v7 = vpop.f32.mrb[0].mxu1  ;;  %v331_v8 = vpop.f32.mrb[1].mxu0 }
  0xe6   : > { %v401_v9 = vadd.f32 %v400_v7, %v250_v2  ;;  %v332_v10 = vadd.f32 %v331_v8, %v246_v3  ;;  %v402_v11 = vpop.f32.mrb[1].mxu1 }
  0xe7   : > { %v405_v12 = vmul.f32 0.01, %v330_v6  ;;  %v403_v13 = vadd.f32 %v402_v11, %v254_v4 }
  0xe8   : > { %v407_v14 = vmul.f32 0.01, %v401_v9  ;;  %v406_v15 = vmul.f32 0.01, %v332_v10 }
  0xe9   : > { %v408_v16 = vmul.f32 0.01, %v403_v13  ;;  %v409_v18 = vmax.f32 %v330_v6, %v405_v12 }
  0xea   : > { %v410_v17 = vmax.f32 %v332_v10, %v406_v15  ;;  %v411_v20 = vmax.f32 %v401_v9, %v407_v14 }
  0xeb   : > { %v412_v19 = vmax.f32 %v403_v13, %v408_v16 }
  0xec   : > { %548 = vmatprep.mubr.f32.mxu0 %v410_v17 }
  0xed   : > { %618 = vmatprep.mubr.f32.mxu1 %v412_v19  ;;  %549 = vmatmul.mubr.f32.vlgmr.msra.gmra.mrb[2].mxu0 %v409_v18 }
  0xee   : > { %619 = vmatmul.mubr.f32.vlgmr.msra.gmra.mrb[2].mxu1 %v411_v20 }
 0x1c0   : > { %v730_v21 = vpop.f32.mrb[2].mxu0 }
 0x1c1   : > { %v765_v22 = vpop.f32.mrb[2].mxu1  ;;  %v731_v24 = vpop.f32.mrb[3].mxu0 }
 0x1c2   : > { %v732_v25 = vadd.f32 %v731_v24, %v730_v21  ;;  %v766_v26 = vpop.f32.mrb[3].mxu1 }
 0x1c3   : > { %v767_v27 = vadd.f32 %v766_v26, %v765_v22 }
 0x1c4   : > { %v551_v28 = vadd.f32 %v732_v25, %v694_v23 }
 0x1c6   : > { %v621_v29 = vadd.f32 %v767_v27, %v551_v28 }
 0x1c8   : > { %v695_v30 = vmul.f32 -1.442695, %v621_v29 }
 0x1ca   : > { %857 = vpow2.f32 %v695_v30 }
 0x1d4   : > { %v858_v31 = vpop.eup %857 }
 0x1d5   : > { %v627_v32 = vadd.f32 1.0, %v858_v31 }
 0x1d7   : > { %859 = vrcp.f32 %v627_v32 }
 0x1e1   : > { %v860_v33 = vpop.eup %859 }
 0x1e2   : > { %631 = vst.msk [vmem:[%s219_s10] sm:$0xff] %vm630_vm1, %v860_v33 }
 0x1e3 PF: > { %s15_s18 = sadd.s32 1, %s867_s18  }
 0x1e4   : > { %p12_p4 = scmp.ge.s32.totalorder %s15_s18, 4  }
 0x1e6   :  { %14 = sbr.rel (!%p12_p4) target bundleno = 1 (0x1), region = 70 }

</bundles_post_ra>
